<compile_context>
chip_gen: v7x
topology: tpu7x:2x2x1
jax: 0.10.0
libtpu: 0.0.40
codegen_flags: <defaults>
</compile_context>

<pallas_src>
import functools
import math

import jax
import jax.numpy as jnp
from jax.experimental import pallas as pl
from jax.experimental.pallas import tpu as pltpu


def _round_up(v, m):
    return -(-v // m) * m


# --------------------------------------------------------------------------- #
# kernels
# --------------------------------------------------------------------------- #
def _gap_kernel_simple(x_ref, coef_ref, o_ref):
    """out = x * a + sum(x, lanes) * (b/HW).  coef columns = [a | b/HW] per row."""
    x = x_ref[...]                                   # (rt, hw), native dtype
    coef = coef_ref[...]                             # (rt, 2) f32
    a = coef[:, 0:1]                                 # (rt, 1)
    bp = coef[:, 1:2]                                # (rt, 1)  == b / HW
    # global average pool over the spatial axis; accumulate in f32 always.
    s = jnp.sum(x, axis=-1, keepdims=True, dtype=jnp.float32)   # (rt, 1)
    if x.dtype == jnp.float32:
        o_ref[...] = (x * a + s * bp).astype(o_ref.dtype)
    else:
        # keep the big block in its native dtype (bf16 VALU on v6e/v7x); only the
        # tiny per-row terms are f32 and cast down — no full-block f32 temp.
        o_ref[...] = (x * a.astype(x.dtype) + (s * bp).astype(x.dtype)).astype(o_ref.dtype)


def _gap_kernel_packed(x_ref, coef_ref, p_ref, pt_ref, o_ref, *, g):
    """Lane-dense path: each VMEM row holds g images' spatial maps back-to-back.

    p  : (g*hw, g) 0/1 matrix with p[j, j//hw] = 1  -> per-image sums via MXU
    pt : (g, g*hw) = p.T                            -> broadcast per-image scalars
    coef columns = [a_0..a_{g-1} | (b/HW)_0..(b/HW)_{g-1}] per packed row.
    """
    x = x_ref[...].astype(jnp.float32)               # (rt, g*hw)
    coef = coef_ref[...]                             # (rt, 2*g) f32
    a = coef[:, :g]                                  # (rt, g)
    bp = coef[:, g:]                                 # (rt, g)  == b / HW
    sums = jnp.dot(x, p_ref[...], preferred_element_type=jnp.float32)          # (rt, g)
    add = jnp.dot(sums * bp, pt_ref[...], preferred_element_type=jnp.float32)  # (rt, g*hw)
    aexp = jnp.dot(a, pt_ref[...], preferred_element_type=jnp.float32)         # (rt, g*hw)
    o_ref[...] = (x * aexp + add).astype(o_ref.dtype)


# --------------------------------------------------------------------------- #
# wrapper
# --------------------------------------------------------------------------- #
def gap_forward(x, fscale_d, fscale_h):
    """x: (N, C, H, W). fscale_d/fscale_h: (C,). Returns same shape/dtype as x."""
    n, c, h, w = x.shape
    nc, hw = n * c, h * w
    itemsize = jnp.dtype(x.dtype).itemsize

    # ---- per-generation knobs ------------------------------------------------
    vmem_cap = 64 << 20                       # conservative default (v7x per-TC)
    try:
        vmem_cap = int(pltpu.get_tpu_info().vmem_capacity_bytes)
    except Exception:
        pass
    kind = ""
    try:
        kind = jax.devices()[0].device_kind.lower()
    except Exception:
        pass
    is_v7 = ("v7" in kind) or vmem_cap <= (80 << 20)
    # v5e (~820 GB/s): 4 MiB steps already amortize the ~0.35us/step overhead;
    # v6e/v7x: ~8 MiB steps keep per-step overhead <~7% of the HBM-bound step.
    target_block_bytes = (4 << 20) if "v5" in kind else (8 << 20)
    # keep >=12 MiB headroom below physical VMEM for Mosaic internal scratch.
    vmem_cap_limit = max(min(vmem_cap - (12 << 20), 100 << 20), 16 << 20)

    def vmem_needed(rt, g):
        row_bytes = g * hw * itemsize
        need = 4 * rt * row_bytes                        # in + out, double-buffered
        need += 2 * rt * _round_up(2 * g, 128) * 4       # coef block (lane padded), x2 bufs
        if g > 1:
            need += 3 * rt * g * hw * 4                  # f32 temps (x_f32, a_exp, add)
            need += 2 * (g * hw * 128 * 4)               # P (g*hw, g), lanes pad to 128, x2
            need += 2 * (_round_up(g, 8) * g * hw * 4)   # P^T (g, g*hw), x2
        elif itemsize < 4:
            need += rt * row_bytes                       # native-dtype temp headroom
        return need + (2 << 20)                          # pipeline / misc slack

    # ---- lane-dense packing factor for hw % 128 != 0 --------------------------
    g = 1
    if hw % 128 != 0:
        g_try = 128 // math.gcd(hw, 128)
        if nc % g_try == 0 and vmem_needed(min(nc // g_try, 8), g_try) <= vmem_cap_limit:
            g = g_try
    # TODO(synk): when hw % 128 != 0 and N*C is not divisible by g the store stays
    # lane-masked; and for extreme H*W (an 8-row block exceeding VMEM) the mean
    # would need lane-chunking across a second grid axis.
    rows = nc // g
    row_hw = g * hw

    # ---- row-tile selection (move ~target_block_bytes per grid step) ----------
    bytes_per_row = row_hw * itemsize
    if rows <= 8:
        row_tile = rows                                  # block == full dim is legal
    else:
        row_tile = max(8, (target_block_bytes // max(bytes_per_row, 1)) // 8 * 8)
        row_tile = min(row_tile, (rows // 8) * 8)        # allow a partial last block
        if is_v7:
            # megacore: make sure both TensorCores get at least one step.
            row_tile = min(row_tile, max(8, _round_up(pl.cdiv(rows, 2), 8)))
        # graceful shrink instead of blowing the VMEM limit.
        while vmem_needed(row_tile, g) > vmem_cap_limit and row_tile > 8:
            row_tile = max(8, (row_tile // 2) // 8 * 8)
        # prefer an even number of steps so neither v7x core does an extra block.
        grid_rows = pl.cdiv(rows, row_tile)
        if is_v7 and grid_rows > 1 and grid_rows % 2 == 1:
            rt2 = max(8, _round_up(pl.cdiv(rows, grid_rows + 1), 8))
            if pl.cdiv(rows, rt2) % 2 == 0 and vmem_needed(rt2, g) <= vmem_cap_limit:
                row_tile = rt2
    grid_rows = pl.cdiv(rows, row_tile)
    vmem_limit = int(min(max(vmem_needed(row_tile, g), 16 << 20), vmem_cap_limit))

    # ---- inputs ---------------------------------------------------------------
    # contiguous NCHW buffer reinterpreted (free): lane axis is a multiple of 128
    # whenever g > 1 or hw % 128 == 0 -> unmasked full-lane loads and stores.
    x2 = x.reshape(rows, row_hw)

    # combined per-row coefficients: out = x*a + sum*(b/HW)
    a_c = fscale_h.astype(jnp.float32) + 1.0
    b_c = (fscale_d.astype(jnp.float32) - fscale_h.astype(jnp.float32) - 1.0) * (1.0 / hw)
    a_r = jnp.tile(a_c, (n,)).reshape(rows, g)
    b_r = jnp.tile(b_c, (n,)).reshape(rows, g)
    coef = jnp.concatenate([a_r, b_r], axis=1)           # (rows, 2g) = [a | b/HW]
    pad_rows = grid_rows * row_tile - rows
    if pad_rows:
        coef = jnp.pad(coef, ((0, pad_rows), (0, 0)))

    x_spec = pl.BlockSpec((row_tile, row_hw), lambda i: (i, 0))
    coef_spec = pl.BlockSpec((row_tile, 2 * g), lambda i: (i, 0))   # per-step, tiny
    out_spec = pl.BlockSpec((row_tile, row_hw), lambda i: (i, 0))

    if g == 1:
        kernel = _gap_kernel_simple
        in_specs = [x_spec, coef_spec]
        operands = (x2, coef)
    else:
        p_mat = jnp.repeat(jnp.eye(g, dtype=jnp.float32), hw, axis=0)   # (g*hw, g)
        kernel = functools.partial(_gap_kernel_packed, g=g)
        in_specs = [
            x_spec,
            coef_spec,
            pl.BlockSpec((row_hw, g), lambda i: (0, 0)),   # P   (small, reused)
            pl.BlockSpec((g, row_hw), lambda i: (0, 0)),   # P^T (small, reused)
        ]
        operands = (x2, coef, p_mat, p_mat.T)

    out2 = pl.pallas_call(
        kernel,
        out_shape=jax.ShapeDtypeStruct((rows, row_hw), x.dtype),
        grid_spec=pltpu.PrefetchScalarGridSpec(
            num_scalar_prefetch=0,
            grid=(grid_rows,),
            in_specs=in_specs,
            out_specs=out_spec,
        ),
        compiler_params=pltpu.CompilerParams(
            dimension_semantics=("parallel",),
            vmem_limit_bytes=vmem_limit,
        ),
    )(*operands)
    return out2.reshape(n, c, h, w)


# --------------------------------------------------------------------------- #
# reference + tests
# --------------------------------------------------------------------------- #
def gap_reference(x, fscale_d, fscale_h):
    x_d = jnp.mean(x, axis=(2, 3), keepdims=True)
    x_h = (x - x_d) * (fscale_h[None, :, None, None] + 1.0)
    return x_d * fscale_d[None, :, None, None] + x_h


def _check(key, shape):
    kx, kd, kh = jax.random.split(key, 3)
    n, c, h, w = shape
    x = jax.random.normal(kx, shape, dtype=jnp.float32)
    # nn.Parameter(torch.zeros(C)) in __init__; use small random values so the
    # per-channel broadcast path is actually exercised.
    fscale_d = 0.1 * jax.random.normal(kd, (c,), dtype=jnp.float32)
    fscale_h = 0.1 * jax.random.normal(kh, (c,), dtype=jnp.float32)

    out = jax.block_until_ready(gap_forward(x, fscale_d, fscale_h))
    ref = gap_reference(x, fscale_d, fscale_h)
    assert out.shape == shape
    assert jnp.allclose(out, ref, atol=1e-5, rtol=1e-5), f"mismatch vs reference for {shape}"


if __name__ == "__main__":
    key = jax.random.PRNGKey(0)
    k1, k2, k3 = jax.random.split(key, 3)

    # primary small test shape (lane-dense hw = 256, single block)
    _check(k1, (2, 4, 16, 16))
    # multi-step grid, per-step coefficient blocks, partial last row block
    _check(k2, (2, 13, 16, 16))
    # non-lane-dense spatial (14x14=196): exercises the g-packed MXU path
    _check(k3, (4, 64, 14, 14))

    print("KERNEL_OK")
</pallas_src>

<mosaic_0001>
module attributes {stable_mosaic.version = 11 : i64} {
  func.func @_gap_kernel_simple(%arg0: i32, %arg1: memref<8x256xf32, #tpu.memory_space<vmem>>, %arg2: memref<8x2xf32, #tpu.memory_space<vmem>>, %arg3: memref<8x256xf32, #tpu.memory_space<vmem>>) attributes {dimension_semantics = [#tpu.dimension_semantics<parallel>], iteration_bounds = array<i64: 1>, scalar_prefetch = 0 : i64, scratch_operands = 0 : i64, tpu.core_type = #tpu.core_type<tc>, window_params = [{transform_indices = @transform_0, window_bounds = array<i64: 8, 256>}, {transform_indices = @transform_1, window_bounds = array<i64: 8, 2>}, {transform_indices = @transform_2, window_bounds = array<i64: 8, 256>}]} {
    %c0 = arith.constant 0 : index
    %c0_0 = arith.constant 0 : index
    %0 = vector.load %arg1[%c0, %c0_0] : memref<8x256xf32, #tpu.memory_space<vmem>>, vector<8x256xf32>
    %c0_1 = arith.constant 0 : index
    %c0_2 = arith.constant 0 : index
    %1 = vector.load %arg2[%c0_1, %c0_2] : memref<8x2xf32, #tpu.memory_space<vmem>>, vector<8x2xf32>
    %2 = vector.extract_strided_slice %1 {offsets = [0, 0], sizes = [8, 1], strides = [1, 1]} : vector<8x2xf32> to vector<8x1xf32>
    %3 = vector.extract_strided_slice %1 {offsets = [0, 1], sizes = [8, 1], strides = [1, 1]} : vector<8x2xf32> to vector<8x1xf32>
    %cst = arith.constant dense<0.000000e+00> : vector<8xf32>
    %4 = vector.multi_reduction <add>, %0, %cst [1] : vector<8x256xf32> to vector<8xf32>
    %5 = vector.shape_cast %4 : vector<8xf32> to vector<8x1xf32>
    %6 = vector.broadcast %2 : vector<8x1xf32> to vector<8x256xf32>
    %7 = arith.mulf %0, %6 : vector<8x256xf32>
    %8 = arith.mulf %5, %3 : vector<8x1xf32>
    %9 = vector.broadcast %8 : vector<8x1xf32> to vector<8x256xf32>
    %10 = arith.addf %7, %9 : vector<8x256xf32>
    %c0_3 = arith.constant 0 : index
    %c0_4 = arith.constant 0 : index
    %11 = vector.load %arg3[%c0_3, %c0_4] : memref<8x256xf32, #tpu.memory_space<vmem>>, vector<8x256xf32>
    tpu.vector_store %arg3[%c0_3, %c0_4], %10 {strides = array<i32>} : memref<8x256xf32, #tpu.memory_space<vmem>>, vector<8x256xf32>,
    return
  }
  func.func @transform_0(%arg0: i32) -> (i32, i32) {
    %c0_i32 = arith.constant 0 : i32
    %c0_i32_0 = arith.constant 0 : i32
    return %arg0, %c0_i32 : i32, i32
  }
  func.func @transform_1(%arg0: i32) -> (i32, i32) {
    %c0_i32 = arith.constant 0 : i32
    %c0_i32_0 = arith.constant 0 : i32
    return %arg0, %c0_i32 : i32, i32
  }
  func.func @transform_2(%arg0: i32) -> (i32, i32) {
    %c0_i32 = arith.constant 0 : i32
    %c0_i32_0 = arith.constant 0 : i32
    return %arg0, %c0_i32 : i32, i32
  }
}

</mosaic_0001>

<bundles_post_ra>
// kernel: tpu_custom_call.1
= control target key start
LH: loop header
LB: loop body
LE: loop exit
PB: predicated region body
PF: predicated region fallthrough
CT: control target
= control target key end

     0   :  { %7 = vsyncpa [#allocation3], 0  ;;  %s163_s0 = inlined_call_operand.hbm [shape: f32[8,256], index: 0, kind: input, shape index: {}]   ;;  %s164_s1 = inlined_call_operand.vmem [shape: f32[8,2], index: 1, kind: input, shape index: {}]   ;;  %s165_s2 = inlined_call_operand.hbm [shape: f32[8,256], index: 2, kind: output, shape index: {}]  }
   0x1   :  { %8 = vsyncpa [#allocation4], 0  ;;  %s117_s9 = smov [#allocation2]   ;;  %s69_s13 = scalar_lea.hbm %s163_s0, 256 }
   0x2   :  { %s15_s10 = sshll.u32 %s117_s9, 4  ;;  %p70_p0 = scmp.ne.s32.totalorder %s163_s0, %s69_s13  ;;  %s16_s10 = int_to_ptr.vmem [resolvable:$true] %s15_s10 }
   0x3   :  { %p73_p1 = scmp.lt.u32.totalorder %s69_s13, %s163_s0 }
   0x5   :  { %p75_p2 = pnand %p73_p1, %p70_p0 }
   0x7   :  { %78 = shalt.err (!%p75_p2)
}
   0x8   :  { %s79_s18 = scalar_lea.vmem %s16_s10, 256  ;;  %p84_p4 = scmp.lt.s32.totalorder %s16_s10, %s16_s10 }
   0x9   :  { %p80_p3 = scmp.ne.s32.totalorder %s16_s10, %s79_s18  ;;  %p85_p5 = scmp.lt.s32.totalorder %s79_s18, %s79_s18 }
   0xb   :  { %p86_p6 = por %p85_p5, %p84_p4 }
   0xd   :  { %p87_p7 = pnand %p86_p6, %p80_p3 }
   0xf   :  { %90 = shalt.err (!%p87_p7)
}
  0x10   :  { %18 = dma.hbm_to_vmem [thread:$0]  %s163_s0, 256, %s16_s10, [#allocation3]  }
  0x11   :  { %113 = dma.done.wait [#allocation3], 256  }
  0x12   :  { %114 = vsyncadd [#allocation3], 4294967040  ;;  %v118_v0 = vmov 0   ;;  %v24_v1 = vld [vmem:[#allocation2] sm:$0xff]  ;;  %v25_v2 = vld [vmem:[#allocation2 + $0x8] sm:$0xff]  ;;  %v119_v4 = vmov 1  }
  0x13   :  { %66 = vset.pattern.permute.xlu0 %v118_v0  ;;  %v27_v3 = vadd.f32 %v25_v2, %v24_v1  ;;  %67 = vset.pattern.permute.xlu1 %v119_v4  ;;  %v26_v5 = vld [vmem:[%s164_s1] sm:$0xff]  ;;  %s120_s0 = smov [#allocation5]  }
  0x14   :  { %s53_s23 = sshll.u32 %s120_s0, 4  ;;  %s54_s23 = int_to_ptr.vmem [resolvable:$true] %s53_s23 }
  0x15   :  { %28 = vadd.xlane.f32.xlu0 %v27_v3  ;;  %s91_s24 = scalar_lea.vmem %s54_s23, 256  ;;  %p96_p9 = scmp.lt.s32.totalorder %s54_s23, %s54_s23 }
  0x16   :  { %p92_p8 = scmp.ne.s32.totalorder %s54_s23, %s91_s24  ;;  %p97_p10 = scmp.lt.s32.totalorder %s91_s24, %s91_s24 }
  0x18   :  { %p98_p11 = por %p97_p10, %p96_p9 }
  0x1a   :  { %p99_p12 = pnand %p98_p11, %p92_p8 }
  0x2b   :  { %32 = vperm.xlu0 %66, %v26_v5  }
  0x2f   :  { %68 = vset.pattern.permute.xlu0 %v119_v4 }
  0xa2   :  { %v29_v6 = vpop.xlane.xlu0 %28 }
  0xa3   :  { %v37_v7 = vmul.f32 %v29_v6, %v26_v5 }
  0xa5   :  { %40 = vperm.xlu1 %67, %v37_v7  }
  0xaa   :  { %v33_v8 = vpop.permute.xlu0 %32 }
  0xab   :  { %v35_v9 = vmul.f32 %v33_v8, %v24_v1  ;;  %v36_v10 = vmul.f32 %v33_v8, %v25_v2 }
 0x124   :  { %v41_v11 = vpop.permute.xlu1 %40 }
 0x125   :  { %v43_v12 = vadd.f32 %v41_v11, %v35_v9  ;;  %v44_v13 = vadd.f32 %v41_v11, %v36_v10 }
 0x127   :  { %45 = vst [vmem:[#allocation5] sm:$0xff] %v43_v12  ;;  %46 = vst [vmem:[#allocation5 + $0x8] sm:$0xff] %v44_v13 }
 0x128   :  { %102 = shalt.err (!%p99_p12)
}
 0x129   :  { %s103_s26 = scalar_lea.hbm %s165_s2, 256 }
 0x12a   :  { %p104_p13 = scmp.ne.s32.totalorder %s165_s2, %s103_s26  ;;  %p107_p0 = scmp.lt.u32.totalorder %s103_s26, %s165_s2 }
 0x12c   :  { %p109_p1 = pnand %p107_p0, %p104_p13 }
 0x12e   :  { %112 = shalt.err (!%p109_p1)
}
 0x12f   :  { %56 = dma.vmem_to_hbm [thread:$0]  %s54_s23, 256, %s165_s2, [#allocation4]  }
 0x130   :  { %115 = dma.done.wait [#allocation4], 256  }
 0x131   :  { %116 = vsyncadd [#allocation4], 4294967040 }
 0x132   :  { %60 = vsyncpa [#allocation3], 1 }
 0x133   :  { %61 = vsyncpa [#allocation4], 1 }

</bundles_post_ra>
